<compile_context>
chip_gen: v7x
topology: tpu7x:2x2x1
jax: 0.10.0
libtpu: 0.0.40
codegen_flags: <defaults>
</compile_context>

<pallas_src>
import functools

import jax
import jax.numpy as jnp
from jax import lax
from jax.experimental import pallas as pl
from jax.experimental.pallas import tpu as pltpu

TREE_DEPTH = 3
N_LEAF = 2 ** TREE_DEPTH          # 8 (== n_nodes; node 0 is never used, as in torch)
N_NODES = N_LEAF
FEATURE_LENGTH = 32
N_TREES = 8
N_CLASSES = 10
ACTIVATION = "sigmoid"
FLT_MIN = float(jnp.finfo(jnp.float32).eps)   # torch: np.finfo(np.float32).eps


def _round_up(x, m):
    return (x + m - 1) // m * m


def _kernel_node_layout(depth):
    """Node-consumption order per layer and the resulting leaf order.

    The kernel's routing step is `mu = concat([mu*d, mu-mu*d], axis=0)` (no
    interleave).  This returns, per layer, the node ids (per tree) in the order
    the kernel consumes them, plus the leaf order of the final mu rows, so the
    wrapper can pack weights / pi accordingly (all permutations happen on tiny
    host-side tensors, never inside the kernel).
    """
    assert depth >= 1
    layer_nodes = []
    current = [1]                       # mu rows <-> these node ids (per tree)
    for _ in range(depth):
        layer_nodes.append(list(current))
        current = [2 * n for n in current] + [2 * n + 1 for n in current]
    leaf_order = [n - 2 ** depth for n in current]
    return layer_nodes, leaf_order


def forest_kernel(x_ref, w_ref, b_ref, pi_ref, pbias_ref, o_ref, *,
                  depth, n_trees, activation):
    """x:(TB,F)  w:(R,F)  b:(R,1)  pi:(L,C)/n_trees  pbias:(C,1)  o:(C,TB).

    R = n_trees*(2**depth - 1) decision nodes, L = n_trees*2**depth leaves.
    """
    # One fused MXU matmul for every node of every tree; the F-contraction is
    # done in-kernel (no wrapper-side x transpose), logits are lane-dense.
    logits = lax.dot_general(
        w_ref[...], x_ref[...],
        dimension_numbers=(((1,), (1,)), ((), ())),     # contract over F
        preferred_element_type=jnp.float32) + b_ref[...]
    if activation == "sigmoid":
        d = jax.nn.sigmoid(logits)                      # (R, TB)
    else:                                               # 'relu'
        d = jnp.maximum(logits, 0.0)

    # Tree routing, vectorized over all trees.  Thanks to the host-side
    # "layer-major, tree-inner" weight packing, every layer is a plain
    # concat of 8-row-aligned blocks -- no sublane shuffles, no per-row copies.
    d0 = d[0:n_trees, :]
    mu = jnp.concatenate([d0, 1.0 - d0], axis=0)        # layer 0 (root mu == 1)
    off = n_trees
    for layer in range(1, depth):
        rows = n_trees * (2 ** layer)
        d_l = d[off:off + rows, :]
        left = mu * d_l
        mu = jnp.concatenate([left, mu - left], axis=0)
        off += rows
    # mu: (n_trees * 2**depth, TB) leaf probabilities (permuted; pi matches).

    # Fused leaf-probability matmul: pi is pre-scaled by 1/n_trees and pbias
    # carries the FLT_MIN correction, so this directly yields the Forest
    # prediction (n_classes, TB) -- lane-dense output, nothing else written.
    pred = lax.dot_general(
        pi_ref[...], mu,
        dimension_numbers=(((0,), (0,)), ((), ())),
        preferred_element_type=jnp.float32)
    o_ref[...] = pred + pbias_ref[...]


def pack_forest_params(feature_masks, fc_w, fc_b, pis, depth=TREE_DEPTH):
    """Fold feature masks into node weights and pack in kernel order.

    feature_masks: (T, F, n_leaf)   fc_w: (T, n_nodes, n_leaf)
    fc_b: (T, n_nodes)              pis:  (T, n_leaf, n_classes)
    """
    n_trees = fc_w.shape[0]
    layer_nodes, leaf_order = _kernel_node_layout(depth)

    feature_masks = feature_masks.astype(jnp.float32)
    fc_w = fc_w.astype(jnp.float32)
    fc_b = fc_b.astype(jnp.float32)
    pis = pis.astype(jnp.float32)

    # Fold the (one-hot) feature selection into each node's weights: (T, N, F).
    # Exact for the one-hot feature_mask the torch module constructs.
    node_w = jnp.einsum("tnl,tfl->tnf", fc_w, feature_masks)

    # Layer-major, tree-inner packing; node 0 (unused by the torch routing) is
    # dropped entirely, saving 1/n_nodes of the matmul + sigmoid work.
    w_blocks, b_blocks = [], []
    for nodes in layer_nodes:
        for n in nodes:
            w_blocks.append(node_w[:, n, :])            # (T, F)
            b_blocks.append(fc_b[:, n])                 # (T,)
    w_all = jnp.concatenate(w_blocks, axis=0)           # (T*(2**depth-1), F)
    b_all = jnp.concatenate(b_blocks, axis=0)[:, None]  # (R, 1)

    # pi rows permuted to match the kernel's leaf order, pre-scaled by
    # 1/n_trees; the FLT_MIN correction becomes a per-class constant bias.
    p_all = jnp.concatenate([pis[:, leaf, :] for leaf in leaf_order], axis=0)
    p_all_scaled = p_all / jnp.float32(n_trees)                       # (L, C)
    pred_bias = (jnp.float32(FLT_MIN)
                 * jnp.sum(p_all_scaled, axis=0))[:, None]            # (C, 1)
    return w_all, b_all, p_all_scaled, pred_bias


def _choose_batch_tile(batch, max_tile):
    """Adaptive batch tile: padding < one tile, and >=2 grid steps (v7x)."""
    b128 = _round_up(max(batch, 1), 128)
    max_tile = max(128, _round_up(max_tile, 128))
    n_steps = -(-b128 // max_tile)
    if b128 >= 2 * 128:
        n_steps = max(n_steps, 2)       # keep both v7x TensorCores busy
    tile = _round_up(-(-b128 // n_steps), 128)
    n_steps = -(-b128 // tile)
    return tile, tile * n_steps


def forest_forward(x, feature_masks, fc_w, fc_b, pis, *,
                   depth=TREE_DEPTH, activation=ACTIVATION,
                   max_block_b=16384, transpose_output=True):
    """Fused Forest forward (eval, use_pi).  x: (B, F) -> (B, n_classes)."""
    B, F = x.shape
    n_trees, n_leaf, n_classes = pis.shape
    assert n_leaf == 2 ** depth

    w_all, b_all, p_all, pred_bias = pack_forest_params(
        feature_masks, fc_w, fc_b, pis, depth)
    n_dec = w_all.shape[0]              # n_trees * (2**depth - 1)
    n_lv = p_all.shape[0]               # n_trees * 2**depth

    # Batch tiling: x tile tb*F*4 and out tile C*tb*4 are double-buffered by
    # BlockSpec; in-kernel temporaries peak around (3*n_dec + 2*n_lv)*tb*4.
    # At the default tb=16384 that is ~20 MiB -> fits the 32 MiB scoped VMEM
    # on every generation (v5e/v6e can raise max_block_b and the limit).
    tb, Bp = _choose_batch_tile(B, max_block_b)
    xb = x.astype(jnp.float32)
    if Bp != B:
        xb = jnp.pad(xb, ((0, Bp - B), (0, 0)))

    kernel = functools.partial(forest_kernel, depth=depth, n_trees=n_trees,
                               activation=activation)
    cost = pl.CostEstimate(
        flops=int(2 * Bp * (n_dec * F + n_lv * n_classes)),
        transcendentals=int(Bp * n_dec),
        bytes_accessed=int(4 * (Bp * (F + n_classes)
                                + w_all.size + b_all.size
                                + p_all.size + pred_bias.size)),
    )

    pred_t = pl.pallas_call(
        kernel,
        out_shape=jax.ShapeDtypeStruct((n_classes, Bp), jnp.float32),
        grid_spec=pltpu.PrefetchScalarGridSpec(
            num_scalar_prefetch=0,
            grid=(Bp // tb,),
            in_specs=[
                pl.BlockSpec((tb, F), lambda i: (i, 0)),            # streamed x (native layout)
                pl.BlockSpec(w_all.shape, lambda i: (0, 0)),        # resident node weights
                pl.BlockSpec(b_all.shape, lambda i: (0, 0)),        # resident node biases
                pl.BlockSpec(p_all.shape, lambda i: (0, 0)),        # resident (scaled) pi
                pl.BlockSpec(pred_bias.shape, lambda i: (0, 0)),    # resident FLT_MIN bias
            ],
            out_specs=pl.BlockSpec((n_classes, tb), lambda i: (0, i)),
        ),
        compiler_params=pltpu.CompilerParams(
            dimension_semantics=("parallel",),
            vmem_limit_bytes=32 * 1024 * 1024,
        ),
        cost_estimate=cost,
    )(xb, w_all, b_all, p_all, pred_bias)

    pred_t = pred_t[:, :B]              # drop padded batch lanes
    if transpose_output:
        return pred_t.T                 # (B, n_classes) -- torch module layout
    return pred_t                       # (n_classes, B) -- lane-dense, for fused consumers


def forest_reference(x, feature_masks, fc_w, fc_b, pis, depth=TREE_DEPTH,
                     activation=ACTIVATION):
    """Pure-JAX mirror of the torch Forest.forward (eval, use_pi) path."""
    n_trees = fc_w.shape[0]
    B = x.shape[0]
    preds = []
    for t in range(n_trees):
        feats = x.astype(jnp.float32) @ feature_masks[t]          # (B, n_leaf)
        logits = feats @ fc_w[t].T + fc_b[t]                      # (B, n_nodes)
        if activation == "sigmoid":
            d = jax.nn.sigmoid(logits)
        else:
            d = jnp.maximum(logits, 0.0)
        mu = jnp.ones((B, 1), jnp.float32)
        big_mu = [jnp.ones((B, 2), jnp.float32)]
        begin = 1
        for layer in range(depth):
            width = 2 ** layer
            cols = []
            for j in range(width):
                dj = d[:, begin + j:begin + j + 1]
                cols.append(mu[:, j:j + 1] * dj)
                cols.append(mu[:, j:j + 1] * (1.0 - dj))
            mu = jnp.concatenate(cols, axis=1)
            big_mu.append(mu)
            begin += width
        big_mu = jnp.concatenate(big_mu, axis=1) + FLT_MIN        # (B, 2**(d+1))
        leaves = big_mu[:, big_mu.shape[1] // 2:]
        preds.append(leaves @ pis[t])
    return sum(preds) / n_trees


if __name__ == "__main__":
    key = jax.random.PRNGKey(0)
    k_x, k_idx, k_w, k_b, k_pi = jax.random.split(key, 5)

    B = 300                                  # small demo batch, not a multiple of 128
    x = jax.random.normal(k_x, (B, FEATURE_LENGTH), dtype=jnp.float32)

    # feature_mask per tree = onehot[using_idx].T  -> (F, n_leaf)
    using_idx = jax.random.randint(k_idx, (N_TREES, N_LEAF), 0, FEATURE_LENGTH)
    eye = jnp.eye(FEATURE_LENGTH, dtype=jnp.float32)
    feature_masks = jnp.transpose(jnp.take(eye, using_idx, axis=0), (0, 2, 1))

    # Stacked nn.Linear(n_leaf, 1) weights/biases for every tree.
    fc_w = 0.5 * jax.random.normal(k_w, (N_TREES, N_NODES, N_LEAF), dtype=jnp.float32)
    fc_b = 0.5 * jax.random.normal(k_b, (N_TREES, N_NODES), dtype=jnp.float32)

    # pi per tree (row-stochastic, standing in for a trained label distribution).
    pis = jax.random.uniform(k_pi, (N_TREES, N_LEAF, N_CLASSES), jnp.float32,
                             minval=1e-3, maxval=1.0)
    pis = pis / jnp.sum(pis, axis=-1, keepdims=True)

    # Small max_block_b so the 1-D batch grid has several steps even at this
    # tiny demo batch (production default is 16384).
    pred = forest_forward(x, feature_masks, fc_w, fc_b, pis, max_block_b=128)
    jax.block_until_ready(pred)
    assert pred.shape == (B, N_CLASSES)

    ref = forest_reference(x, feature_masks, fc_w, fc_b, pis)
    assert jnp.allclose(pred, ref, atol=1e-5, rtol=1e-5), \
        float(jnp.max(jnp.abs(pred - ref)))

    print("KERNEL_OK")
</pallas_src>

<mosaic_0001>
module attributes {stable_mosaic.version = 11 : i64} {
  func.func @forest_kernel(%arg0: i32, %arg1: memref<128x32xf32, #tpu.memory_space<vmem>>, %arg2: memref<56x32xf32, #tpu.memory_space<vmem>>, %arg3: memref<56x1xf32, #tpu.memory_space<vmem>>, %arg4: memref<64x10xf32, #tpu.memory_space<vmem>>, %arg5: memref<10x1xf32, #tpu.memory_space<vmem>>, %arg6: memref<10x128xf32, #tpu.memory_space<vmem>>) attributes {dimension_semantics = [#tpu.dimension_semantics<parallel>], iteration_bounds = array<i64: 3>, scalar_prefetch = 0 : i64, scratch_operands = 0 : i64, tpu.core_type = #tpu.core_type<tc>, window_params = [{transform_indices = @transform_0, window_bounds = array<i64: 128, 32>}, {pipeline_mode = #tpu.pipeline_mode<synchronous>, transform_indices = @transform_1, window_bounds = array<i64: 56, 32>}, {pipeline_mode = #tpu.pipeline_mode<synchronous>, transform_indices = @transform_2, window_bounds = array<i64: 56, 1>}, {pipeline_mode = #tpu.pipeline_mode<synchronous>, transform_indices = @transform_3, window_bounds = array<i64: 64, 10>}, {pipeline_mode = #tpu.pipeline_mode<synchronous>, transform_indices = @transform_4, window_bounds = array<i64: 10, 1>}, {transform_indices = @transform_5, window_bounds = array<i64: 10, 128>}]} {
    %c0 = arith.constant 0 : index
    %c0_0 = arith.constant 0 : index
    %0 = vector.load %arg2[%c0, %c0_0] : memref<56x32xf32, #tpu.memory_space<vmem>>, vector<56x32xf32>
    %c0_1 = arith.constant 0 : index
    %c0_2 = arith.constant 0 : index
    %1 = vector.load %arg1[%c0_1, %c0_2] : memref<128x32xf32, #tpu.memory_space<vmem>>, vector<128x32xf32>
    %cst = arith.constant dense<0.000000e+00> : vector<56x128xf32>
    %2 = tpu.matmul %0, %1, %cst {dimension_numbers = #tpu.dot_dimension_numbers<[1], [1], [0], [0], [0, 0, 1, 0], [], []>} : vector<56x32xf32>, vector<128x32xf32>, vector<56x128xf32> -> vector<56x128xf32>
    %c0_3 = arith.constant 0 : index
    %c0_4 = arith.constant 0 : index
    %3 = vector.load %arg3[%c0_3, %c0_4] : memref<56x1xf32, #tpu.memory_space<vmem>>, vector<56x1xf32>
    %4 = vector.broadcast %3 : vector<56x1xf32> to vector<56x128xf32>
    %5 = arith.addf %2, %4 : vector<56x128xf32>
    %6 = arith.negf %5 : vector<56x128xf32>
    %7 = math.exp %6 : vector<56x128xf32>
    %cst_5 = arith.constant 1.000000e+00 : f32
    %8 = vector.broadcast %cst_5 : f32 to vector<56x128xf32>
    %9 = arith.addf %8, %7 : vector<56x128xf32>
    %10 = arith.divf %8, %9 : vector<56x128xf32>
    %11 = vector.extract_strided_slice %10 {offsets = [0, 0], sizes = [8, 128], strides = [1, 1]} : vector<56x128xf32> to vector<8x128xf32>
    %cst_6 = arith.constant 1.000000e+00 : f32
    %12 = vector.broadcast %cst_6 : f32 to vector<8x128xf32>
    %13 = arith.subf %12, %11 : vector<8x128xf32>
    %14 = tpu.concatenate %11, %13 in 0 : vector<8x128xf32>, vector<8x128xf32> -> vector<16x128xf32>
    %15 = vector.extract_strided_slice %10 {offsets = [8, 0], sizes = [16, 128], strides = [1, 1]} : vector<56x128xf32> to vector<16x128xf32>
    %16 = arith.mulf %14, %15 : vector<16x128xf32>
    %17 = arith.subf %14, %16 : vector<16x128xf32>
    %18 = tpu.concatenate %16, %17 in 0 : vector<16x128xf32>, vector<16x128xf32> -> vector<32x128xf32>
    %19 = vector.extract_strided_slice %10 {offsets = [24, 0], sizes = [32, 128], strides = [1, 1]} : vector<56x128xf32> to vector<32x128xf32>
    %20 = arith.mulf %18, %19 : vector<32x128xf32>
    %21 = arith.subf %18, %20 : vector<32x128xf32>
    %22 = tpu.concatenate %20, %21 in 0 : vector<32x128xf32>, vector<32x128xf32> -> vector<64x128xf32>
    %c0_7 = arith.constant 0 : index
    %c0_8 = arith.constant 0 : index
    %23 = vector.load %arg4[%c0_7, %c0_8] : memref<64x10xf32, #tpu.memory_space<vmem>>, vector<64x10xf32>
    %cst_9 = arith.constant dense<0.000000e+00> : vector<10x128xf32>
    %24 = tpu.matmul %23, %22, %cst_9 {dimension_numbers = #tpu.dot_dimension_numbers<[0], [0], [1], [1], [0, 1, 1, 1], [], []>} : vector<64x10xf32>, vector<64x128xf32>, vector<10x128xf32> -> vector<10x128xf32>
    %c0_10 = arith.constant 0 : index
    %c0_11 = arith.constant 0 : index
    %25 = vector.load %arg5[%c0_10, %c0_11] : memref<10x1xf32, #tpu.memory_space<vmem>>, vector<10x1xf32>
    %26 = vector.broadcast %25 : vector<10x1xf32> to vector<10x128xf32>
    %27 = arith.addf %24, %26 : vector<10x128xf32>
    %c0_12 = arith.constant 0 : index
    %c0_13 = arith.constant 0 : index
    %28 = vector.load %arg6[%c0_12, %c0_13] : memref<10x128xf32, #tpu.memory_space<vmem>>, vector<10x128xf32>
    tpu.vector_store %arg6[%c0_12, %c0_13], %27 {strides = array<i32>} : memref<10x128xf32, #tpu.memory_space<vmem>>, vector<10x128xf32>,
    return
  }
  func.func @transform_0(%arg0: i32) -> (i32, i32) {
    %c0_i32 = arith.constant 0 : i32
    %c0_i32_0 = arith.constant 0 : i32
    return %arg0, %c0_i32 : i32, i32
  }
  func.func @transform_1(%arg0: i32) -> (i32, i32) {
    %c0_i32 = arith.constant 0 : i32
    %c0_i32_0 = arith.constant 0 : i32
    %c0_i32_1 = arith.constant 0 : i32
    return %c0_i32, %c0_i32_0 : i32, i32
  }
  func.func @transform_2(%arg0: i32) -> (i32, i32) {
    %c0_i32 = arith.constant 0 : i32
    %c0_i32_0 = arith.constant 0 : i32
    %c0_i32_1 = arith.constant 0 : i32
    return %c0_i32, %c0_i32_0 : i32, i32
  }
  func.func @transform_3(%arg0: i32) -> (i32, i32) {
    %c0_i32 = arith.constant 0 : i32
    %c0_i32_0 = arith.constant 0 : i32
    %c0_i32_1 = arith.constant 0 : i32
    return %c0_i32, %c0_i32_0 : i32, i32
  }
  func.func @transform_4(%arg0: i32) -> (i32, i32) {
    %c0_i32 = arith.constant 0 : i32
    %c0_i32_0 = arith.constant 0 : i32
    %c0_i32_1 = arith.constant 0 : i32
    return %c0_i32, %c0_i32_0 : i32, i32
  }
  func.func @transform_5(%arg0: i32) -> (i32, i32) {
    %c0_i32 = arith.constant 0 : i32
    %c0_i32_0 = arith.constant 0 : i32
    return %c0_i32, %arg0 : i32, i32
  }
}

</mosaic_0001>

<bundles_post_ra>
// kernel: tpu_custom_call.1
= control target key start
LH: loop header
LB: loop body
LE: loop exit
PB: predicated region body
PF: predicated region fallthrough
CT: control target
= control target key end

     0   :  { %10 = vsyncpa [#allocation3], 0  ;;  %s1345_s0 = inlined_call_operand.vmem [shape: f32[384,32], index: 0, kind: input, shape index: {}]   ;;  %s1346_s1 = inlined_call_operand.vmem [shape: f32[56,32], index: 1, kind: input, shape index: {}]   ;;  %s1347_s2 = inlined_call_operand.vmem [shape: f32[56,1], index: 2, kind: input, shape index: {}]   ;;  %s1348_s3 = inlined_call_operand.vmem [shape: f32[64,10], index: 3, kind: input, shape index: {}]   ;;  %s1349_s4 = inlined_call_operand.vmem [shape: f32[10,1], index: 4, kind: input, shape index: {}]   ;;  %s1350_s5 = inlined_call_operand.hbm [shape: f32[10,384], index: 5, kind: output, shape index: {}]  }
   0x1   :  { %12 = vsyncpa [#allocation3 + $0x1], 0  ;;  %s1100_s18 = smov 0   ;;  %s1102_s19 = smov 0  }
   0x2   :  { %s1104_s20 = smov 0   ;;  %s1106_s21 = smov 0  }
   0x3 LB: > { %s1121_s22 = sadd.s32 4294967295, %s1060_s21   ;;  %s726_s23 = sadd.s32 4294967294, %s1060_s21   ;;  %s1060_s21 = sphi %s1106_s21, %s1358_s21   ;;  %s1056_s20 = sphi %s1104_s20, %s1357_s20   ;;  %s1052_s19 = sphi %s1102_s19, %s1356_s19   ;;  %s1048_s18 = sphi %s1100_s18, %s1355_s18  }
   0x4   : > { %s1125_s24 = sadd.s32 1, %s1060_s21   ;;  %s135_s25 = sadd.s32 1, %s1056_s20 }
   0x5   : > { %s132_s26 = ssub.s32 %s1060_s21, %s1125_s24  ;;  %p145_p0 = scmp.ne.s32.totalorder %s1056_s20, %s1052_s19 }
   0x6   : > { %p133_p1 = scmp.eq.s32.totalorder %s132_s26, 0  ;;  %p146_p2 = scmp.eq.s32.totalorder %s1121_s22, 2 }
   0x7   : > { %p151_p3 = scmp.ne.s32.totalorder %s1052_s19, %s1048_s18  ;;  %p152_p4 = scmp.eq.s32.totalorder %s726_s23, 2 }
   0x8   : > { %s1136_s27 = scalar_select %p133_p1, %s1056_s20, %s135_s25  }
   0x9   : > { %p1138_p5 = por %p146_p2, %p145_p0  ;;  %p1142_p6 = por %p152_p4, %p151_p3 }
   0xa   : > { %p729_p7 = scmp.ge.s32.totalorder %s1060_s21, 1  ;;  %p191_p8 = scmp.lt.s32.totalorder %s1060_s21, 4 }
   0xc   : > { %p192_p9 = pnand %p729_p7, %p191_p8 }
   0xd   : > { %s731_s30 = sshll.u32 (!%p192_p9), %s1121_s22, 4  ;;  %v1062_v0 = vmov (!%p192_p9), 0.0|0.0   ;;  %vm1063_vm0 = vmmov (!%p192_p9), 0   ;;  %v1064_v1 = vmov (!%p192_p9), 0.0   ;;  %v1065_v2 = vmov (!%p192_p9), 0   ;;  %v248_v3 = vld [vmem:[%s1347_s2] sm:$0xff] (!%p192_p9) }
   0xe   : > { %195 = sbr.rel (%p192_p9) target bundleno = 601 (0x259), region = 40  ;;  %874 = vmatprep.subr.bf16.mxu0 (!%p192_p9), %v1062_v0  ;;  %p220_p10 = scmp.lt.s32.totalorder (!%p192_p9), %s731_s30, 47  ;;  %834 = vmatprep.mubr.msk.f32.mxu0 (!%p192_p9), %vm1063_vm0, %v1064_v1  ;;  %vm290_vm1 = vcmask (!%p192_p9), 261120   ;;  %v250_v4 = vld [vmem:[%s1347_s2 + $0x10] sm:$0xff] (!%p192_p9)  ;;  %v249_v5 = vld [vmem:[%s1347_s2 + $0x8] sm:$0xff] (!%p192_p9)  ;;  %v251_v6 = vld [vmem:[%s1347_s2 + $0x18] sm:$0xff] (!%p192_p9) }
   0xf   : > { %968 = vset.pattern.permute.xlu0 (!%p192_p9), %v1065_v2  ;;  %969 = vset.pattern.permute.xlu1 (!%p192_p9), %v1065_v2  ;;  %vm1173_vm2 = vmpackc.low (!%p192_p9), %vm290_vm1, %vm290_vm1  ;;  %v252_v11 = vld [vmem:[%s1347_s2 + $0x20] sm:$0xff] (!%p192_p9)  ;;  %v253_v12 = vld [vmem:[%s1347_s2 + $0x28] sm:$0xff] (!%p192_p9)  ;;  %vm567_vm3 = vcmask (!%p192_p9), 523264   ;;  %s766_s14 = sshll.u32 (!%p192_p9), %s1121_s22, 7  ;;  %s1066_s26 = smov (!%p192_p9), [#allocation2]  }
  0x10   : > { %257 = vperm.xlu0 (!%p192_p9), %968, %v248_v3   ;;  %267 = vperm.xlu1 (!%p192_p9), %969, %v250_v4   ;;  %v254_v15 = vld [vmem:[%s1347_s2 + $0x30] sm:$0xff] (!%p192_p9)  ;;  %v523_v17 = vld [vmem:[%s1349_s4] sm:$0xff] (!%p192_p9)  ;;  %v524_v20 = vld [vmem:[%s1349_s4 + $0x8] sm:$0x3] (!%p192_p9)  ;;  %s1302_s23 = scalar_lea.hbm (!%p192_p9), %s1350_s5, %s766_s14 }
  0x11   : > { %v515_v33 = vld [vmem:[%s1348_s3] sm:$0xff] (!%p192_p9)  ;;  %v516_v35 = vld [vmem:[%s1348_s3 + $0x8] sm:$0xff] (!%p192_p9)  ;;  %v517_v38 = vld [vmem:[%s1348_s3 + $0x10] sm:$0xff] (!%p192_p9) }
  0x12   : > { %v518_v40 = vld [vmem:[%s1348_s3 + $0x18] sm:$0xff] (!%p192_p9)  ;;  %v519_v41 = vld [vmem:[%s1348_s3 + $0x20] sm:$0xff] (!%p192_p9)  ;;  %v520_v43 = vld [vmem:[%s1348_s3 + $0x28] sm:$0xff] (!%p192_p9) }
  0x13   : > { %v225_v42 = vld [vmem:[%s1346_s1] sm:$0xff] (!%p192_p9)  ;;  %v226_v44 = vld [vmem:[%s1346_s1 + $0x8] sm:$0xff] (!%p192_p9)  ;;  %v521_v45 = vld [vmem:[%s1348_s3 + $0x30] sm:$0xff] (!%p192_p9) }
  0x14   : > { %262 = vperm.xlu0 (!%p192_p9), %968, %v249_v5   ;;  %272 = vperm.xlu1 (!%p192_p9), %969, %v251_v6   ;;  %v227_v46 = vld [vmem:[%s1346_s1 + $0x10] sm:$0xff] (!%p192_p9)  ;;  %v522_v47 = vld [vmem:[%s1348_s3 + $0x38] sm:$0xff] (!%p192_p9)  ;;  %v229_v49 = vld [vmem:[%s1346_s1 + $0x20] sm:$0xff] (!%p192_p9) }
  0x15   : > { %s1360_s30 = smov (!%p220_p10, %s731_s30), 47  ;;  %v228_v48 = vld [vmem:[%s1346_s1 + $0x18] sm:$0xff]  ;;  %v230_v50 = vld [vmem:[%s1346_s1 + $0x28] sm:$0xff]  ;;  %v231_v51 = vld [vmem:[%s1346_s1 + $0x30] sm:$0xff] }
  0x16   : > { %s732_s10 = sshll.u32 %s1360_s30, 3  ;;  %s1002_s30 = sshll.u32 %s1066_s26, 4  ;;  %s1003_s30 = int_to_ptr.vmem [resolvable:$false] %s1002_s30 }
  0x17   : > { %s1164_s15 = scalar_lea.vmem %s1345_s0, %s732_s10  ;;  %s216_s10 = sand.u32 1, %s1052_s19  }
  0x18   : > { %v232_v7 = vld [vmem:[%s1164_s15] sm:$0xff]  ;;  %v233_v8 = vld [vmem:[%s1164_s15 + $0x8] sm:$0xff]  ;;  %v234_v13 = vld [vmem:[%s1164_s15 + $0x10] sm:$0xff]  ;;  %277 = vperm.xlu0 %968, %v252_v11   ;;  %282 = vperm.xlu1 %969, %v253_v12   ;;  %s730_s11 = sshll.u32 %s216_s10, 4  ;;  %s1304_s25 = scalar_lea.sflag [#allocation3], %s216_s10 }
  0x19   : > { %v875_v10 = vpack.c.bf16 %v233_v8, %v232_v7  ;;  %v235_v14 = vld [vmem:[%s1164_s15 + $0x18] sm:$0xff]  ;;  %v236_v18 = vld [vmem:[%s1164_s15 + $0x20] sm:$0xff]  ;;  %v237_v19 = vld [vmem:[%s1164_s15 + $0x28] sm:$0xff]  ;;  %s218_s12 = scalar_lea.vmem [#allocation2], %s730_s11  ;;  %s1004_s6 = scalar_lea.vmem %s1003_s30, 512 }
  0x1a   : > { %v879_v16 = vpack.c.bf16 %v235_v14, %v234_v13  ;;  %v883_v21 = vpack.c.bf16 %v237_v19, %v236_v18  ;;  %v238_v22 = vld [vmem:[%s1164_s15 + $0x30] sm:$0xff]  ;;  %v239_v23 = vld [vmem:[%s1164_s15 + $0x38] sm:$0xff]  ;;  %v240_v25 = vld [vmem:[%s1164_s15 + $0x40] sm:$0xff]  ;;  %s664_s13 = sshll.u32 %s218_s12, 4  ;;  %s1297_s13 = int_to_ptr.vmem [resolvable:$true] %s664_s13 }
  0x1b   : > { %877 = vmatpush3.bf16.xpose.msk.msra.mxu0 %vm1173_vm2, %v875_v10  ;;  %v887_v24 = vpack.c.bf16 %v239_v23, %v238_v22  ;;  %v241_v26 = vld [vmem:[%s1164_s15 + $0x48] sm:$0xff]  ;;  %v242_v28 = vld [vmem:[%s1164_s15 + $0x50] sm:$0xff]  ;;  %v243_v29 = vld [vmem:[%s1164_s15 + $0x58] sm:$0xff]  ;;  %s998_s22 = scalar_lea.vmem %s1297_s13, 256  ;;  %p1005_p0 = scmp.lt.s32.totalorder %s1297_s13, %s1003_s30 }
  0x1c   : > { %878 = vmatprep.subr.bf16.mxu0 %v1062_v0  ;;  %287 = vperm.xlu0 %968, %v254_v15   ;;  %v891_v27 = vpack.c.bf16 %v241_v26, %v240_v25  ;;  %v895_v30 = vpack.c.bf16 %v243_v29, %v242_v28  ;;  %v244_v31 = vld [vmem:[%s1164_s15 + $0x60] sm:$0xff]  ;;  %v245_v32 = vld [vmem:[%s1164_s15 + $0x68] sm:$0xff]  ;;  %v246_v36 = vld [vmem:[%s1164_s15 + $0x70] sm:$0xff]  ;;  %p999_p11 = scmp.ne.s32.totalorder %s1297_s13, %s998_s22  ;;  %p1006_p1 = scmp.lt.s32.totalorder %s1004_s6, %s998_s22 }
  0x1d   : > { %v899_v34 = vpack.c.bf16 %v245_v32, %v244_v31  ;;  %v247_v37 = vld [vmem:[%s1164_s15 + $0x78] sm:$0xff] }
  0x1e   : > { %v903_v39 = vpack.c.bf16 %v247_v37, %v246_v36  ;;  %p1000_p12 = pnand %p999_p11, %p1138_p5  ;;  %p1007_p2 = por %p1006_p1, %p1005_p0 }
  0x20   : > { %527 = vperm.xlu0 %968, %v523_v17   ;;  %p1001_p13 = pneg %p1000_p12 }
  0x22   : > { %p1008_p3 = pnand %p1007_p2, %p1001_p13 }
  0x23   : > { %881 = vmatpush3.bf16.xpose.msk.msra.mxu0 %vm1173_vm2, %v879_v16 }
  0x24   : > { %882 = vmatprep.subr.bf16.mxu0 %v1062_v0  ;;  %532 = vperm.xlu0 %968, %v524_v20  }
  0x2b   : > { %885 = vmatpush3.bf16.xpose.msk.msra.mxu0 %vm1173_vm2, %v883_v21 }
  0x2c   : > { %886 = vmatprep.subr.bf16.mxu0 %v1062_v0 }
  0x33   : > { %889 = vmatpush3.bf16.xpose.msk.msra.mxu0 %vm1173_vm2, %v887_v24 }
  0x34   : > { %890 = vmatprep.subr.bf16.mxu0 %v1062_v0 }
  0x3b   : > { %893 = vmatpush3.bf16.xpose.msk.msra.mxu0 %vm1173_vm2, %v891_v27 }
  0x3c   : > { %894 = vmatprep.subr.bf16.mxu0 %v1062_v0 }
  0x41   : > { %535 = vxpose.xlu1.b32.start [1/8] (short) (narrow) %v515_v33, 16 }
  0x43   : > { %897 = vmatpush3.bf16.xpose.msk.msra.mxu0 %vm1173_vm2, %v895_v30 }
  0x44   : > { %898 = vmatprep.subr.bf16.mxu0 %v1062_v0 }
  0x45   : > { %536 = vxpose.xlu1.b32.cont [2/8] (short) (narrow) %v516_v35, 16 }
  0x49   : > { %537 = vxpose.xlu1.b32.cont [3/8] (short) (narrow) %v517_v38, 16 }
  0x4b   : > { %901 = vmatpush3.bf16.xpose.msk.msra.mxu0 %vm1173_vm2, %v899_v34 }
  0x4c   : > { %902 = vmatprep.subr.bf16.mxu0 %v1062_v0 }
  0x4d   : > { %538 = vxpose.xlu1.b32.cont [4/8] (short) (narrow) %v518_v40, 16 }
  0x51   : > { %539 = vxpose.xlu1.b32.cont [5/8] (short) (narrow) %v519_v41, 16 }
  0x53   : > { %905 = vmatpush3.bf16.xpose.msk.msra.mxu0 %vm1173_vm2, %v903_v39 }
  0x55   : > { %540 = vxpose.xlu1.b32.cont [6/8] (short) (narrow) %v520_v43, 16 }
  0x59   : > { %541 = vxpose.xlu1.b32.cont [7/8] (short) (narrow) %v521_v45, 16 }
  0x5a   : > { %835 = vmatmul.mubr.msk.f32.vlgmr.msra.gmra.mrb[0].mxu0 %vm290_vm1, %v225_v42 }
  0x5b   : > { %837 = vmatprep.mubr.msk.f32.mxu0 %vm1063_vm0, %v1064_v1 }
  0x5d   : > { %542 = vxpose.xlu1.b32.end [8/8] (short) (narrow) %v522_v47, 16 }
  0x5e   : > { %838 = vmatmul.mubr.msk.f32.gmra.mrb[2].mxu0 %vm290_vm1, %v226_v44 }
  0x5f   : > { %840 = vmatprep.mubr.msk.f32.mxu0 %vm1063_vm0, %v1064_v1 }
  0x62   : > { %841 = vmatmul.mubr.msk.f32.gmra.mrb[4].mxu0 %vm290_vm1, %v227_v46 }
  0x63   : > { %843 = vmatprep.mubr.msk.f32.mxu0 %vm1063_vm0, %v1064_v1 }
  0x66   : > { %844 = vmatmul.mubr.msk.f32.gmra.mrb[6].mxu0 %vm290_vm1, %v228_v48 }
  0x67   : > { %846 = vmatprep.mubr.msk.f32.mxu0 %vm1063_vm0, %v1064_v1 }
  0x6a   : > { %847 = vmatmul.mubr.msk.f32.gmra.mrb[8].mxu0 %vm290_vm1, %v229_v49 }
  0x6b   : > { %849 = vmatprep.mubr.msk.f32.mxu0 %vm1063_vm0, %v1064_v1 }
  0x6e   : > { %850 = vmatmul.mubr.msk.f32.gmra.mrb[10].mxu0 %vm290_vm1, %v230_v50 }
  0x6f   : > { %852 = vmatprep.mubr.msk.f32.mxu0 %vm1063_vm0, %v1064_v1 }
  0x72   : > { %853 = vmatmul.mubr.msk.f32.gmra.mrb[12].mxu0 %vm290_vm1, %v231_v51 }
  0x8f   : > { %v268_v52 = vpop.permute.xlu1 %267  ;;  %v258_v56 = vpop.permute.xlu0 %257 }
  0x93   : > { %v273_v53 = vpop.permute.xlu1 %272  ;;  %v263_v61 = vpop.permute.xlu0 %262 }
  0x97   : > { %v283_v54 = vpop.permute.xlu1 %282  ;;  %v278_v11 = vpop.permute.xlu0 %277 }
  0x9b   : > { %v288_v24 = vpop.permute.xlu0 %287 }
  0xc1   : > { %v551_v55 = vpop.trf.xlu1 }
  0xc2   : > { %871 = vmatprep.mubr.msk.f32.mxu1 %vm567_vm3, %v551_v55 }
 0x12d   : > { %v426_v57 = vpop.f32.mrb[0].mxu0 }
 0x12e   : > { %v427_v58 = vadd.f32 %v426_v57, %v258_v56  ;;  %v836_v59 = vpop.f32.mrb[1].mxu0 }
 0x130   : > { %v756_v60 = vmul.f32 -1.442695, %v427_v58 }
 0x131   : > { %v431_v62 = vpop.f32.mrb[2].mxu0 }
 0x132   : > { %970 = vpow2.f32 %v756_v60  ;;  %v432_v63 = vadd.f32 %v431_v62, %v263_v61  ;;  %v839_v0 = vpop.f32.mrb[3].mxu0  ;;  %v552_v62 = vpop.trf.xlu1 }
 0x134   : > { %v757_v1 = vmul.f32 -1.442695, %v432_v63  ;;  %v528_v63 = vpop.permute.xlu0 %527 }
 0x135   : > { %v436_v2 = vpop.f32.mrb[4].mxu0 }
 0x136   : > { %972 = vpow2.f32 %v757_v1  ;;  %v437_v3 = vadd.f32 %v436_v2, %v268_v52  ;;  %v842_v4 = vpop.f32.mrb[5].mxu0 }
 0x138   : > { %v758_v5 = vmul.f32 -1.442695, %v437_v3  ;;  %v533_v0 = vpop.permute.xlu0 %532 }
 0x139   : > { %v441_v6 = vpop.f32.mrb[6].mxu0 }
 0x13a   : > { %974 = vpow2.f32 %v758_v5  ;;  %v442_v7 = vadd.f32 %v441_v6, %v273_v53  ;;  %v845_v8 = vpop.f32.mrb[7].mxu0 }
 0x13c   : > { %v971_v9 = vpop.eup %970  ;;  %v759_v10 = vmul.f32 -1.442695, %v442_v7 }
 0x13d   : > { %v481_v12 = vadd.f32 1.0, %v971_v9  ;;  %v446_v13 = vpop.f32.mrb[8].mxu0 }
 0x13e   : > { %976 = vpow2.f32 %v759_v10  ;;  %v447_v14 = vadd.f32 %v446_v13, %v278_v11  ;;  %v848_v15 = vpop.f32.mrb[9].mxu0 }
 0x13f   : > { %978 = vrcp.f32 %v481_v12 }
 0x140   : > { %v973_v16 = vpop.eup %972  ;;  %v760_v17 = vmul.f32 -1.442695, %v447_v14 }
 0x141   : > { %v482_v18 = vadd.f32 1.0, %v973_v16  ;;  %v451_v19 = vpop.f32.mrb[10].mxu0 }
 0x142   : > { %980 = vpow2.f32 %v760_v17  ;;  %v452_v20 = vadd.f32 %v451_v19, %v283_v54  ;;  %v851_v21 = vpop.f32.mrb[11].mxu0 }
 0x143   : > { %982 = vrcp.f32 %v482_v18 }
 0x144   : > { %v975_v22 = vpop.eup %974  ;;  %v761_v23 = vmul.f32 -1.442695, %v452_v20 }
 0x145   : > { %v483_v25 = vadd.f32 1.0, %v975_v22  ;;  %v456_v26 = vpop.f32.mrb[12].mxu0 }
 0x146   : > { %984 = vpow2.f32 %v761_v23  ;;  %v457_v27 = vadd.f32 %v456_v26, %v288_v24  ;;  %v854_v28 = vpop.f32.mrb[13].mxu0 }
 0x147   : > { %986 = vrcp.f32 %v483_v25 }
 0x148   : > { %v977_v29 = vpop.eup %976  ;;  %v762_v30 = vmul.f32 -1.442695, %v457_v27 }
 0x149   : > { %v484_v31 = vadd.f32 1.0, %v977_v29  ;;  %v979_v32 = vpop.eup %978 }
 0x14a   : > { %988 = vpow2.f32 %v762_v30  ;;  %v502_v38 = vsub.f32 1.0, %v979_v32 }
 0x14b   : > { %990 = vrcp.f32 %v484_v31 }
 0x14c   : > { %v981_v33 = vpop.eup %980 }
 0x14d   : > { %v983_v34 = vpop.eup %982  ;;  %v485_v35 = vadd.f32 1.0, %v981_v33 }
 0x14e   : > { %v503_v36 = vmul.f32 %v983_v34, %v979_v32 }
 0x14f   : > { %992 = vrcp.f32 %v485_v35 }
 0x150   : > { %v985_v37 = vpop.eup %984  ;;  %v505_v39 = vsub.f32 %v979_v32, %v503_v36 }
 0x151   : > { %v987_v40 = vpop.eup %986  ;;  %v486_v41 = vadd.f32 1.0, %v985_v37 }
 0x152   : > { %v504_v42 = vmul.f32 %v987_v40, %v502_v38 }
 0x153   : > { %994 = vrcp.f32 %v486_v41 }
 0x154   : > { %v989_v43 = vpop.eup %988  ;;  %v506_v44 = vsub.f32 %v502_v38, %v504_v42 }
 0x155   : > { %v991_v45 = vpop.eup %990  ;;  %v487_v46 = vadd.f32 1.0, %v989_v43 }
 0x156   : > { %v507_v47 = vmul.f32 %v991_v45, %v503_v36 }
 0x157   : > { %996 = vrcp.f32 %v487_v46 }
 0x158   : > { %v511_v48 = vsub.f32 %v503_v36, %v507_v47 }
 0x159   : > { %v993_v49 = vpop.eup %992 }
 0x15a   : > { %v508_v50 = vmul.f32 %v993_v49, %v504_v42 }
 0x15c   : > { %v512_v51 = vsub.f32 %v504_v42, %v508_v50  ;;  %v906_v52 = vpack.c.bf16 %v508_v50, %v507_v47 }
 0x15d   : > { %v995_v53 = vpop.eup %994 }
 0x15e   : > { %907 = vmatprep.subr.bf16.mxu1 %v906_v52  ;;  %v509_v54 = vmul.f32 %v995_v53, %v505_v39  ;;  %v914_v55 = vpack.c.bf16 %v512_v51, %v511_v48 }
 0x15f   : > { %909 = vmatpush3.bf16.msra.mxu1 %v906_v52 }
 0x160   : > { %v513_v56 = vsub.f32 %v505_v39, %v509_v54 }
 0x161   : > { %v997_v57 = vpop.eup %996 }
 0x162   : > { %v510_v58 = vmul.f32 %v997_v57, %v506_v44 }
 0x164   : > { %v910_v59 = vpack.c.bf16 %v510_v58, %v509_v54  ;;  %v514_v60 = vsub.f32 %v506_v44, %v510_v58 }
 0x166   : > { %911 = vmatprep.subr.bf16.mxu1 %v910_v59  ;;  %v918_v61 = vpack.c.bf16 %v514_v60, %v513_v56 }
 0x167   : > { %913 = vmatpush3.bf16.msra.mxu1 %v910_v59 }
 0x168   : > { %915 = vmatprep.subr.bf16.mxu1 %v914_v55 }
 0x16b   : > { %917 = vmatpush3.bf16.msra.mxu1 %v914_v55 }
 0x16c   : > { %919 = vmatprep.subr.bf16.mxu1 %v918_v61 }
 0x16f   : > { %921 = vmatpush3.bf16.msra.mxu1 %v918_v61 }
 0x172   : > { %872 = vmatmul.mubr.msk.f32.vlgmr.msra.gmra.mrb[0].mxu1 %vm567_vm3, %v552_v62 }
 0x245   : > { %v873_v1 = vpop.f32.mrb[0].mxu1 }
 0x246   : > { %v646_v2 = vadd.f32 %v873_v1, %v533_v0  ;;  %v640_v3 = vpop.f32.mrb[1].mxu1 }
 0x247   : > { %v641_v4 = vadd.f32 %v640_v3, %v528_v63 }
 0x248   : > { %650 = vst [vmem:[%s218_s12 + $0x8] sm:$0x3] %v646_v2 }
 0x249   : > { %649 = vst [vmem:[%s218_s12] sm:$0xff] %v641_v4 }
 0x24a   : > { %1011 = shalt.err (!%p1008_p3)
}
 0x24b   : > { %s1012_s7 = scalar_lea.hbm %s1302_s23, 256  ;;  %s1016_s9 = scalar_lea.hbm %s1350_s5, 768 }
 0x24c   : > { %p1013_p4 = scmp.ne.s32.totalorder %s1302_s23, %s1012_s7  ;;  %p1017_p9 = scmp.lt.u32.totalorder %s1302_s23, %s1350_s5 }
 0x24d   : > { %p1018_p10 = scmp.lt.u32.totalorder %s1016_s9, %s1012_s7  ;;  %p1020_p12 = scmp.lt.u32.totalorder %s1012_s7, %s1302_s23 }
 0x24e   : > { %p1014_p7 = pnand %p1013_p4, %p1138_p5 }
 0x24f   : > { %p1019_p11 = por %p1018_p10, %p1017_p9 }
 0x250   : > { %p1015_p8 = pneg %p1014_p7 }
 0x251   : > { %p1021_p13 = por %p1020_p12, %p1019_p11 }
 0x253   : > { %p1022_p0 = pnand %p1021_p13, %p1015_p8 }
 0x255   : > { %1025 = shalt.err (!%p1022_p0)
}
 0x256   : > { %s1067_s12 = smov 128   ;;  %s1068_s14 = smov 384  }
 0x257   : > { %s1069_s16 = smov 8  }
 0x258   : > { %922 = dma.vmem_to_hbm [thread:$0]  (%p1138_p5), %s1297_s13, 256, %s1302_s23, %s1304_s25, %s1067_s12, %s1068_s14, %s1069_s16  }
 0x259 PF: > { %p928_p1 = scmp.ge.s32.totalorder %s1060_s21, 2  ;;  %s679_s17 = sand.u32 1, %s1048_s18  }
 0x25a   : > { %s680_s22 = scalar_lea.sflag [#allocation3], %s679_s17 }
 0x25b   : > { %p925_p2 = pnand %p928_p1, %p1142_p6 }
 0x25d   : > { %1043 = dma.done.wait (!%p925_p2), %s680_s22, 256  }
 0x25e   : > { %1045 = vsyncadd (!%p925_p2), %s680_s22, 4294967040  ;;  %p15_p3 = scmp.ge.s32.totalorder %s1125_s24, 5   ;;  %s1355_s18 = smov %s1052_s19 }
 0x25f   : > { %s1356_s19 = smov %s1056_s20  ;;  %s1357_s20 = smov %s1136_s27 }
 0x260   : > { %s1358_s21 = smov %s1125_s24  ;;  %17 = sbr.rel (!%p15_p3) target bundleno = 3 (0x3), region = 75 }
 0x267   :  { %685 = vsyncpa [#allocation3], 1 }
 0x268   :  { %687 = vsyncpa [#allocation3 + $0x1], 1 }

</bundles_post_ra>
